<compile_context>
chip_gen: v6e
topology: v6e:2x2x1
jax: 0.10.0
libtpu: 0.0.40
codegen_flags: <defaults>
</compile_context>

<pallas_src>
import jax
import jax.numpy as jnp
from jax.experimental import pallas as pl
from jax.experimental.pallas import tpu as pltpu


_LANE = 1024                        # lane-dense last dim (multiple of 128)
_TILE_ROWS = 1024                   # (1024, 1024) f32 block = 4 MiB
_TILE_ELEMS = _TILE_ROWS * _LANE    # 1-D ragged-path block, same 4 MiB budget
_VMEM_LIMIT = 32 * 1024 * 1024      # lifts v5e above its 16 MiB scoped default;
                                    # 2 bufs x (in+out) x 4 MiB = 16 MiB resident
                                    # also fits v6e/v7x's 32 MiB scoped default.


def _hardpish_kernel(w_ref, x_ref, o_ref):
    """Rank-agnostic elementwise body (works on 2-D row tiles or 1-D blocks).

    w_ref: SMEM (5,) float32 scalars; x_ref / o_ref: VMEM tiles.
    """
    w0 = w_ref[0]
    inv_w1 = 1.0 / w_ref[1]           # exact scalar reciprocal, computed once
    w2 = w_ref[2]
    w3 = w_ref[3]
    w4 = w_ref[4]

    x = x_ref[...]
    zero = jnp.zeros((), dtype=x.dtype)

    pos = jnp.maximum(x, zero)        # relu(x)
    neg = jnp.minimum(x, zero)        # == -relu(-x)   (bit-identical)

    factor_pos = w0 * pos
    depth_neg = neg * jnp.maximum(neg + w3, zero) * inv_w1
    factor_neg = jnp.minimum(w2 * neg, zero)          # == -relu(-(w2 * neg))

    o_ref[...] = factor_pos + depth_neg + factor_neg + w4


def hardpish_pallas(x, weight):
    """x: any-shape float32 array; weight: (5,) float32. Returns hardpish(x)."""
    orig_shape = x.shape
    total = x.size
    flat = x.reshape(-1)              # contiguous bitcast view, no HBM traffic

    compiler_params = pltpu.CompilerParams(
        dimension_semantics=("parallel",),
        vmem_limit_bytes=_VMEM_LIMIT,
    )
    w_spec = pl.BlockSpec(memory_space=pltpu.SMEM)    # weight scalars

    if total % _LANE == 0:
        # Aligned path: lane-dense 2-D slab, unmasked vst, no padding at all.
        rows = total // _LANE
        x2d = flat.reshape(rows, _LANE)
        # Full extent when small (block dim == array dim satisfies the (8,128)
        # rule); otherwise 1024-row / 4 MiB blocks, partial edge block masked.
        tile_rows = rows if rows <= _TILE_ROWS else _TILE_ROWS
        grid = (pl.cdiv(rows, tile_rows),)
        out = pl.pallas_call(
            _hardpish_kernel,
            out_shape=jax.ShapeDtypeStruct((rows, _LANE), x.dtype),
            grid=grid,
            in_specs=[w_spec,
                      pl.BlockSpec((tile_rows, _LANE), lambda i: (i, 0))],
            out_specs=pl.BlockSpec((tile_rows, _LANE), lambda i: (i, 0)),
            compiler_params=compiler_params,
        )(weight, x2d)
    else:
        # Ragged path: operate on the flat 1-D array directly; the last block
        # is partial and Pallas masks its writeback.  No whole-array pad/slice,
        # so ragged inputs hit the same HBM roofline as aligned ones.
        block = min(_TILE_ELEMS, pl.cdiv(total, _LANE) * _LANE)  # mult. of 128
        grid = (pl.cdiv(total, block),)
        out = pl.pallas_call(
            _hardpish_kernel,
            out_shape=jax.ShapeDtypeStruct((total,), x.dtype),
            grid=grid,
            in_specs=[w_spec,
                      pl.BlockSpec((block,), lambda i: (i,))],
            out_specs=pl.BlockSpec((block,), lambda i: (i,)),
            compiler_params=compiler_params,
        )(weight, flat)

    return out.reshape(orig_shape)


def hardpish_ref(x, weight):
    """Pure-JAX reference mirroring the PyTorch hardpish()."""
    pos = jnp.maximum(x, 0.0)
    neg = -jnp.maximum(-x, 0.0)
    factor_pos = weight[0] * pos
    depth_neg = neg * jnp.maximum(neg + weight[3], 0.0) / weight[1]
    factor_neg = -jnp.maximum(-weight[2] * neg, 0.0)
    bias = weight[4]
    return factor_pos + depth_neg + factor_neg + bias


if __name__ == "__main__":
    # Deterministic parameter init exactly as in HardPish.__init__.
    weight = jnp.array([1.0, 7.0, 0.1, 3.0, 0.0], dtype=jnp.float32)

    key = jax.random.PRNGKey(0)
    k1, k2 = jax.random.split(key)

    # Primary small NCHW input (total is an exact multiple of the lane width
    # -> exercises the aligned 2-D path).
    x = jax.random.normal(k1, (2, 4, 16, 16), dtype=jnp.float32)
    y = jax.block_until_ready(hardpish_pallas(x, weight))
    y_ref = hardpish_ref(x, weight)
    assert y.shape == x.shape and y.dtype == x.dtype
    assert jnp.allclose(y, y_ref, atol=1e-5, rtol=1e-5), "mismatch vs reference"

    # Odd-sized input -> exercises the pad-free ragged 1-D path with a
    # partially-masked edge block.
    x_odd = jax.random.normal(k2, (2, 3, 15, 17), dtype=jnp.float32)
    y_odd = jax.block_until_ready(hardpish_pallas(x_odd, weight))
    y_odd_ref = hardpish_ref(x_odd, weight)
    assert y_odd.shape == x_odd.shape and y_odd.dtype == x_odd.dtype
    assert jnp.allclose(y_odd, y_odd_ref, atol=1e-5, rtol=1e-5), "mismatch (ragged path)"

    print("KERNEL_OK")
</pallas_src>

<mosaic_0001>
module attributes {stable_mosaic.version = 11 : i64} {
  func.func @_hardpish_kernel(%arg0: i32, %arg1: memref<5xf32, #tpu.memory_space<smem>>, %arg2: memref<2x1024xf32, #tpu.memory_space<vmem>>, %arg3: memref<2x1024xf32, #tpu.memory_space<vmem>>) attributes {dimension_semantics = [#tpu.dimension_semantics<parallel>], iteration_bounds = array<i64: 1>, scalar_prefetch = 0 : i64, scratch_operands = 0 : i64, tpu.core_type = #tpu.core_type<tc>, window_params = [{transform_indices = @transform_0, window_bounds = array<i64: 5>}, {transform_indices = @transform_1, window_bounds = array<i64: 2, 1024>}, {transform_indices = @transform_2, window_bounds = array<i64: 2, 1024>}]} {
    %c0 = arith.constant 0 : index
    %0 = memref.load %arg1[%c0] : memref<5xf32, #tpu.memory_space<smem>>
    %c1 = arith.constant 1 : index
    %1 = memref.load %arg1[%c1] : memref<5xf32, #tpu.memory_space<smem>>
    %cst = arith.constant 1.000000e+00 : f32
    %2 = arith.divf %cst, %1 : f32
    %c2 = arith.constant 2 : index
    %3 = memref.load %arg1[%c2] : memref<5xf32, #tpu.memory_space<smem>>
    %c3 = arith.constant 3 : index
    %4 = memref.load %arg1[%c3] : memref<5xf32, #tpu.memory_space<smem>>
    %c4 = arith.constant 4 : index
    %5 = memref.load %arg1[%c4] : memref<5xf32, #tpu.memory_space<smem>>
    %c0_0 = arith.constant 0 : index
    %c0_1 = arith.constant 0 : index
    %6 = vector.load %arg2[%c0_0, %c0_1] : memref<2x1024xf32, #tpu.memory_space<vmem>>, vector<2x1024xf32>
    %cst_2 = arith.constant 0.000000e+00 : f32
    %7 = vector.broadcast %cst_2 : f32 to vector<2x1024xf32>
    %8 = arith.maximumf %6, %7 : vector<2x1024xf32>
    %cst_3 = arith.constant 0.000000e+00 : f32
    %9 = vector.broadcast %cst_3 : f32 to vector<2x1024xf32>
    %10 = arith.minimumf %6, %9 : vector<2x1024xf32>
    %11 = vector.broadcast %0 : f32 to vector<2x1024xf32>
    %12 = arith.mulf %11, %8 : vector<2x1024xf32>
    %13 = vector.broadcast %4 : f32 to vector<2x1024xf32>
    %14 = arith.addf %10, %13 : vector<2x1024xf32>
    %cst_4 = arith.constant 0.000000e+00 : f32
    %15 = vector.broadcast %cst_4 : f32 to vector<2x1024xf32>
    %16 = arith.maximumf %14, %15 : vector<2x1024xf32>
    %17 = arith.mulf %10, %16 : vector<2x1024xf32>
    %18 = vector.broadcast %2 : f32 to vector<2x1024xf32>
    %19 = arith.mulf %17, %18 : vector<2x1024xf32>
    %20 = vector.broadcast %3 : f32 to vector<2x1024xf32>
    %21 = arith.mulf %20, %10 : vector<2x1024xf32>
    %cst_5 = arith.constant 0.000000e+00 : f32
    %22 = vector.broadcast %cst_5 : f32 to vector<2x1024xf32>
    %23 = arith.minimumf %21, %22 : vector<2x1024xf32>
    %24 = arith.addf %12, %19 : vector<2x1024xf32>
    %25 = arith.addf %24, %23 : vector<2x1024xf32>
    %26 = vector.broadcast %5 : f32 to vector<2x1024xf32>
    %27 = arith.addf %25, %26 : vector<2x1024xf32>
    %c0_6 = arith.constant 0 : index
    %c0_7 = arith.constant 0 : index
    %28 = vector.load %arg3[%c0_6, %c0_7] : memref<2x1024xf32, #tpu.memory_space<vmem>>, vector<2x1024xf32>
    tpu.vector_store %arg3[%c0_6, %c0_7], %27 {strides = array<i32>} : memref<2x1024xf32, #tpu.memory_space<vmem>>, vector<2x1024xf32>,
    return
  }
  func.func @transform_0(%arg0: i32) -> i32 {
    %c0_i32 = arith.constant 0 : i32
    %c0_i32_0 = arith.constant 0 : i32
    return %c0_i32 : i32
  }
  func.func @transform_1(%arg0: i32) -> (i32, i32) {
    %c0_i32 = arith.constant 0 : i32
    %c0_i32_0 = arith.constant 0 : i32
    return %arg0, %c0_i32 : i32, i32
  }
  func.func @transform_2(%arg0: i32) -> (i32, i32) {
    %c0_i32 = arith.constant 0 : i32
    %c0_i32_0 = arith.constant 0 : i32
    return %arg0, %c0_i32 : i32, i32
  }
}

</mosaic_0001>

<bundles_post_ra>
// kernel: tpu_custom_call.1
= control target key start
LH: loop header
LB: loop body
LE: loop exit
PB: predicated region body
PF: predicated region fallthrough
CT: control target
= control target key end

     0   :  { %7 = vsyncpa [#allocation5], 0  ;;  %s184_s0 = inlined_call_operand.hbm [shape: f32[5], index: 0, kind: input, shape index: {}]   ;;  %s185_s1 = inlined_call_operand.hbm [shape: f32[2,1024], index: 1, kind: input, shape index: {}]   ;;  %s186_s2 = inlined_call_operand.hbm [shape: f32[2,1024], index: 2, kind: output, shape index: {}]  }
   0x1   :  { %8 = vsyncpa [#allocation3], 0 }
   0x2   :  { %9 = vsyncpa [#allocation4], 0  ;;  %s157_s9 = smov [#allocation2]   ;;  %s158_s12 = smov [#allocation6]  }
   0x3   :  { %17 = dma.hbm_to_smem %s184_s0, 16, %s157_s9, [#allocation5]  }
   0x4   :  { %s24_s13 = sshll.u32 %s158_s12, 4  ;;  %s25_s13 = int_to_ptr.vmem [resolvable:$true] %s24_s13 }
   0x5   :  { %s119_s14 = scalar_lea.vmem %s25_s13, 256  ;;  %p124_p1 = scmp.lt.s32.totalorder %s25_s13, %s25_s13 }
   0x6   :  { %p120_p0 = scmp.ne.s32.totalorder %s25_s13, %s119_s14  ;;  %p125_p2 = scmp.lt.s32.totalorder %s119_s14, %s119_s14 }
   0x8   :  { %p126_p3 = por %p125_p2, %p124_p1 }
   0xa   :  { %p127_p4 = pnand %p126_p3, %p120_p0 }
   0xc   :  { %130 = shalt.err (!%p127_p4)
}
   0xd   :  { %27 = dma.hbm_to_vmem [thread:$0]  %s185_s1, 256, %s25_s13, [#allocation3]  }
   0xe   :  { %151 = dma.done.wait [#allocation5], 16  }
   0xf   :  { %152 = vsyncadd [#allocation5], 4294967280 }
  0x10   :  { %153 = dma.done.wait [#allocation3], 256  }
  0x11   :  { %154 = vsyncadd [#allocation3], 4294967040 }
  0x12   :  { %34 = sfence }
  0x13   :  { %s92_s0 = sld [smem:[#allocation2 + $0x1]]  ;;  %v43_v2 = vld [vmem:[#allocation6] sm:$0xff]  ;;  %v44_v3 = vld [vmem:[#allocation6 + $0x8] sm:$0xff]  ;;  %s159_s21 = smov [#allocation7]  }
  0x14   :  { %s94_s17 = sld [smem:[#allocation2 + $0x3]]  ;;  %v47_v4 = vmin.f32 %v43_v2, 0.0  ;;  %v48_v5 = vmin.f32 %v44_v3, 0.0  ;;  %v45_v12 = vmax.f32 %v43_v2, 0.0  ;;  %v46_v13 = vmax.f32 %v44_v3, 0.0  ;;  %s82_s22 = sshll.u32 %s159_s21, 4  ;;  %s83_s22 = int_to_ptr.vmem [resolvable:$true] %s82_s22 }
  0x15   :  { %s93_s18 = sld [smem:[#allocation2 + $0x2]]  ;;  %s131_s23 = scalar_lea.vmem %s83_s22, 256 }
  0x16   :  { %s35_s19 = sld [smem:[#allocation2]]  ;;  %p132_p5 = scmp.ne.s32.totalorder %s83_s22, %s131_s23 }
  0x17   :  { %s95_s1 = sld [smem:[#allocation2 + $0x4]]  ;;  %p136_p6 = scmp.lt.s32.totalorder %s83_s22, %s83_s22 }
  0x18   :  { %p137_p7 = scmp.lt.s32.totalorder %s131_s23, %s131_s23 }
  0x19   :  { %v37_v0 = vstv %s92_s0 }
  0x1a   :  { %101 = vrcp.f32 %v37_v0  ;;  %v52_v6 = vstv %s94_s17  ;;  %p138_p8 = por %p137_p7, %p136_p6 }
  0x1b   :  { %v53_v7 = vadd.f32 %v52_v6, %v47_v4  ;;  %v54_v8 = vadd.f32 %v52_v6, %v48_v5  ;;  %v62_v11 = vstv %s93_s18 }
  0x1c   :  { %v49_v14 = vstv %s35_s19  ;;  %v63_v17 = vmul.f32 %v62_v11, %v47_v4  ;;  %v64_v18 = vmul.f32 %v62_v11, %v48_v5  ;;  %p139_p9 = pnand %p138_p8, %p132_p5 }
  0x1d   :  { %v55_v9 = vmax.f32 %v53_v7, 0.0  ;;  %v56_v10 = vmax.f32 %v54_v8, 0.0  ;;  %v50_v19 = vmul.f32 %v49_v14, %v45_v12  ;;  %v51_v20 = vmul.f32 %v49_v14, %v46_v13 }
  0x1e   :  { %v65_v24 = vmin.f32 %v63_v17, 0.0  ;;  %v66_v25 = vmin.f32 %v64_v18, 0.0  ;;  %v71_v28 = vstv %s95_s1 }
  0x1f   :  { %v57_v15 = vmul.f32 %v55_v9, %v47_v4  ;;  %v58_v16 = vmul.f32 %v56_v10, %v48_v5 }
  0x27   :  { %v102_v1 = vpop.eup %101 }
  0x28   :  { %96 = vpush %v102_v1 }
  0x59   :  { %s97_s20 = spop %96 }
  0x5a   :  { %v59_v21 = vstv %s97_s20 }
  0x5b   :  { %v60_v22 = vmul.f32 %v59_v21, %v57_v15  ;;  %v61_v23 = vmul.f32 %v59_v21, %v58_v16 }
  0x5d   :  { %v67_v26 = vadd.f32 %v60_v22, %v50_v19  ;;  %v68_v27 = vadd.f32 %v61_v23, %v51_v20 }
  0x5f   :  { %v69_v29 = vadd.f32 %v67_v26, %v65_v24  ;;  %v70_v30 = vadd.f32 %v68_v27, %v66_v25 }
  0x61   :  { %v72_v31 = vadd.f32 %v71_v28, %v69_v29  ;;  %v73_v32 = vadd.f32 %v71_v28, %v70_v30 }
  0x63   :  { %74 = vst [vmem:[#allocation7] sm:$0xff] %v72_v31  ;;  %75 = vst [vmem:[#allocation7 + $0x8] sm:$0xff] %v73_v32 }
  0x64   :  { %142 = shalt.err (!%p139_p9)
}
  0x65   :  { %85 = dma.vmem_to_hbm [thread:$0]  %s83_s22, 256, %s186_s2, [#allocation4]  }
  0x66   :  { %155 = dma.done.wait [#allocation4], 256  }
  0x67   :  { %156 = vsyncadd [#allocation4], 4294967040 }
  0x68   :  { %89 = vsyncpa [#allocation3], 1 }
  0x69   :  { %90 = vsyncpa [#allocation4], 1 }
  0x6a   :  { %91 = vsyncpa [#allocation5], 1 }

</bundles_post_ra>
